<compile_context>
chip_gen: v7x
topology: tpu7x:2x2x1
jax: 0.10.0
libtpu: 0.0.40
codegen_flags: <defaults>
</compile_context>

<pallas_src>
import functools

import jax
import jax.numpy as jnp
from jax import lax
from jax.experimental import pallas as pl
from jax.experimental.pallas import tpu as pltpu


def gene_attention_kernel(src_ref, dst_ref, x_ref, out_ref,
                          g_ref, w_ref, m_ref, l_ref,
                          *, alpha, n_edges):
    kb = pl.program_id(0)
    e_blk = src_ref.shape[1]
    x = x_ref[...]                       # [N, D] f32, resident across the grid
    n = x.shape[0]

    # ---- init on the first edge block: Gram matrix + accumulators ----
    @pl.when(kb == 0)
    def _init():
        # G = x @ x.T  (rhs-transposed dot_general, contraction over D)
        g_ref[...] = lax.dot_general(
            x, x, (((1,), (1,)), ((), ())),
            preferred_element_type=jnp.float32)
        w_ref[...] = jnp.zeros_like(w_ref)
        m_ref[...] = jnp.full_like(m_ref, -jnp.inf)
        l_ref[...] = jnp.zeros_like(l_ref)

    src = src_ref[...]                   # [1, E_blk] i32 (lane-dense)
    dst = dst_ref[...]                   # [1, E_blk] i32

    # Transposed one-hots [N, E_blk] — built directly in the orientation the
    # MXU wants, so no transpose is needed for either matmul below.
    row = lax.broadcasted_iota(jnp.int32, (n, e_blk), 0)
    oh_src = (src == row).astype(jnp.float32)          # [N, E_blk]
    oh_dst = (dst == row).astype(jnp.float32)          # [N, E_blk]

    # Per-edge scores, lane-dense:  s[e] = G[dst_e, src_e]
    a = jnp.dot(g_ref[...], oh_src,
                preferred_element_type=jnp.float32)    # [N, E_blk], A[m,e]=G[m,src_e]
    s = jnp.sum(a * oh_dst, axis=0, keepdims=True)     # [1, E_blk]

    # LeakyReLU(alpha)
    s = jnp.where(s >= 0, s, alpha * s)

    # Mask padded ("ghost") edges in the last block.
    lane = lax.broadcasted_iota(jnp.int32, (1, e_blk), 1)
    valid = (kb * e_blk + lane) < n_edges
    s = jnp.where(valid, s, -1e30)

    # ---- online softmax over the global edge dimension ----
    m_old = m_ref[...]                                          # [1, 1]
    m_new = jnp.maximum(m_old, jnp.max(s, axis=1, keepdims=True))
    scale = jnp.exp(m_old - m_new)                              # [1, 1]
    p = jnp.exp(s - m_new)                                      # [1, E_blk]; 0 on ghosts
    l_ref[...] = l_ref[...] * scale + jnp.sum(p, axis=1, keepdims=True)
    m_ref[...] = m_new

    # W[n, m] += sum_e p_e * [src_e == n][dst_e == m]
    # (rhs-transposed dot_general; contraction over the edge block)
    w_blk = lax.dot_general(
        oh_src, oh_dst * p, (((1,), (1,)), ((), ())),
        preferred_element_type=jnp.float32)                     # [N, N]
    w_ref[...] = w_ref[...] * scale + w_blk

    # ---- finalize on the last edge block ----
    @pl.when(kb == pl.num_programs(0) - 1)
    def _finalize():
        # Normalisation happens exactly once, so the exact reciprocal is free
        # and keeps bit-level fidelity with the f32 reference.
        inv_l = pl.reciprocal(l_ref[...], approx=False)         # [1, 1]
        h = jnp.dot(w_ref[...], x,
                    preferred_element_type=jnp.float32) * inv_l
        out_ref[...] = (h + x).astype(out_ref.dtype)


def gene_attention_layer(drug_embeddings, drug_relationships, alpha,
                         *, edge_block=128):
    """drug_embeddings: [N, D] f32; drug_relationships: [E, 2] int edges."""
    assert edge_block % 128 == 0, "edge_block must be lane-dense (multiple of 128)"
    x = jnp.asarray(drug_embeddings, jnp.float32)
    edges = jnp.asarray(drug_relationships, jnp.int32)
    N, D = x.shape
    E = edges.shape[0]

    # Pad the edge list to a whole number of lane-dense blocks; ghost edges
    # point at node 0 and are masked to contribute 0 inside the kernel.
    e_pad = max(edge_block, ((E + edge_block - 1) // edge_block) * edge_block)
    pad = e_pad - E
    src = jnp.pad(edges[:, 0], (0, pad)).reshape(1, e_pad)
    dst = jnp.pad(edges[:, 1], (0, pad)).reshape(1, e_pad)
    num_blocks = e_pad // edge_block

    kernel = functools.partial(gene_attention_kernel,
                               alpha=float(alpha), n_edges=E)

    return pl.pallas_call(
        kernel,
        out_shape=jax.ShapeDtypeStruct((N, D), jnp.float32),
        grid_spec=pltpu.PrefetchScalarGridSpec(
            num_scalar_prefetch=0,
            grid=(num_blocks,),
            in_specs=[
                pl.BlockSpec((1, edge_block), lambda kb: (0, kb)),   # src ids
                pl.BlockSpec((1, edge_block), lambda kb: (0, kb)),   # dst ids
                pl.BlockSpec((N, D), lambda kb: (0, 0)),             # x (resident)
            ],
            out_specs=pl.BlockSpec((N, D), lambda kb: (0, 0)),       # h (resident)
            scratch_shapes=[
                pltpu.VMEM((N, N), jnp.float32),   # G = x @ x.T
                pltpu.VMEM((N, N), jnp.float32),   # un-normalised W accumulator
                pltpu.VMEM((1, 1), jnp.float32),   # running max
                pltpu.VMEM((1, 1), jnp.float32),   # running denominator
            ],
        ),
        compiler_params=pltpu.CompilerParams(
            dimension_semantics=("arbitrary",),        # sequential reduction axis
            vmem_limit_bytes=32 * 1024 * 1024,         # safe on v5e/v6e/v7x
        ),
    )(src, dst, x)


def _reference(drug_embeddings, drug_relationships, alpha):
    x = jnp.asarray(drug_embeddings, jnp.float32)
    edges = jnp.asarray(drug_relationships, jnp.int32)
    src, dst = edges[:, 0], edges[:, 1]
    drug_i = x[src]
    drug_j = x[dst]
    s = jnp.sum(drug_i * drug_j, axis=1)
    s = jnp.where(s >= 0, s, alpha * s)
    p = jax.nn.softmax(s, axis=0)
    weighted = drug_j * p[:, None]
    h = jnp.zeros_like(x).at[src].add(weighted)
    return h + x


if __name__ == "__main__":
    key = jax.random.PRNGKey(0)
    N, D, E = 16, 32, 300            # drugs, embed_dim, edges (spans 3 edge blocks)
    alpha = 0.2

    k_emb, k_src, k_dst = jax.random.split(key, 3)
    drug_embeddings = jax.random.normal(k_emb, (N, D), dtype=jnp.float32)
    src = jax.random.randint(k_src, (E,), 0, N, dtype=jnp.int32)
    dst = jax.random.randint(k_dst, (E,), 0, N, dtype=jnp.int32)
    drug_relationships = jnp.stack([src, dst], axis=1)   # [E, 2] list-of-pairs

    out = gene_attention_layer(drug_embeddings, drug_relationships, alpha)
    out = jax.block_until_ready(out)

    ref = _reference(drug_embeddings, drug_relationships, alpha)
    assert out.shape == (N, D)
    assert jnp.allclose(out, ref, atol=1e-4, rtol=1e-4), "mismatch vs JAX reference"

    print("KERNEL_OK")
</pallas_src>

<mosaic_0001>
module attributes {stable_mosaic.version = 11 : i64} {
  func.func @gene_attention_kernel(%arg0: i32, %arg1: memref<1x128xi32, #tpu.memory_space<vmem>>, %arg2: memref<1x128xi32, #tpu.memory_space<vmem>>, %arg3: memref<16x32xf32, #tpu.memory_space<vmem>>, %arg4: memref<16x32xf32, #tpu.memory_space<vmem>>, %arg5: memref<16x16xf32, #tpu.memory_space<vmem>>, %arg6: memref<16x16xf32, #tpu.memory_space<vmem>>, %arg7: memref<1x1xf32, #tpu.memory_space<vmem>>, %arg8: memref<1x1xf32, #tpu.memory_space<vmem>>) attributes {dimension_semantics = [#tpu.dimension_semantics<arbitrary>], iteration_bounds = array<i64: 3>, scalar_prefetch = 0 : i64, scratch_operands = 4 : i64, tpu.core_type = #tpu.core_type<tc>, window_params = [{transform_indices = @transform_0, window_bounds = array<i64: 1, 128>}, {transform_indices = @transform_1, window_bounds = array<i64: 1, 128>}, {pipeline_mode = #tpu.pipeline_mode<synchronous>, transform_indices = @transform_2, window_bounds = array<i64: 16, 32>}, {pipeline_mode = #tpu.pipeline_mode<synchronous>, transform_indices = @transform_3, window_bounds = array<i64: 16, 32>}]} {
    %c0 = arith.constant 0 : index
    %c0_0 = arith.constant 0 : index
    %0 = vector.load %arg3[%c0, %c0_0] : memref<16x32xf32, #tpu.memory_space<vmem>>, vector<16x32xf32>
    %c0_i32 = arith.constant 0 : i32
    %1 = arith.cmpi eq, %arg0, %c0_i32 : i32
    %2 = arith.extui %1 : i1 to i32
    %c0_i32_1 = arith.constant 0 : i32
    %3 = arith.cmpi ne, %2, %c0_i32_1 : i32
    scf.if %3 {
      %cst_28 = arith.constant dense<0.000000e+00> : vector<16x16xf32>
      %60 = tpu.matmul %0, %0, %cst_28 {dimension_numbers = #tpu.dot_dimension_numbers<[1], [1], [0], [0], [0, 0, 1, 0], [], []>} : vector<16x32xf32>, vector<16x32xf32>, vector<16x16xf32> -> vector<16x16xf32>
      %c0_29 = arith.constant 0 : index
      %c0_30 = arith.constant 0 : index
      %61 = vector.load %arg5[%c0_29, %c0_30] : memref<16x16xf32, #tpu.memory_space<vmem>>, vector<16x16xf32>
      tpu.vector_store %arg5[%c0_29, %c0_30], %60 {strides = array<i32>} : memref<16x16xf32, #tpu.memory_space<vmem>>, vector<16x16xf32>,
      %cst_31 = arith.constant 0.000000e+00 : f32
      %62 = vector.broadcast %cst_31 : f32 to vector<16x16xf32>
      %c0_32 = arith.constant 0 : index
      %c0_33 = arith.constant 0 : index
      %63 = vector.load %arg6[%c0_32, %c0_33] : memref<16x16xf32, #tpu.memory_space<vmem>>, vector<16x16xf32>
      tpu.vector_store %arg6[%c0_32, %c0_33], %62 {strides = array<i32>} : memref<16x16xf32, #tpu.memory_space<vmem>>, vector<16x16xf32>,
      %cst_34 = arith.constant 0xFF800000 : f32
      %64 = vector.broadcast %cst_34 : f32 to vector<1x1xf32>
      %c0_35 = arith.constant 0 : index
      %c0_36 = arith.constant 0 : index
      %65 = vector.load %arg7[%c0_35, %c0_36] : memref<1x1xf32, #tpu.memory_space<vmem>>, vector<1x1xf32>
      tpu.vector_store %arg7[%c0_35, %c0_36], %64 {strides = array<i32>} : memref<1x1xf32, #tpu.memory_space<vmem>>, vector<1x1xf32>,
      %cst_37 = arith.constant 0.000000e+00 : f32
      %66 = vector.broadcast %cst_37 : f32 to vector<1x1xf32>
      %c0_38 = arith.constant 0 : index
      %c0_39 = arith.constant 0 : index
      %67 = vector.load %arg8[%c0_38, %c0_39] : memref<1x1xf32, #tpu.memory_space<vmem>>, vector<1x1xf32>
      tpu.vector_store %arg8[%c0_38, %c0_39], %66 {strides = array<i32>} : memref<1x1xf32, #tpu.memory_space<vmem>>, vector<1x1xf32>,
    } else {
    }
    %c0_2 = arith.constant 0 : index
    %c0_3 = arith.constant 0 : index
    %4 = vector.load %arg1[%c0_2, %c0_3] : memref<1x128xi32, #tpu.memory_space<vmem>>, vector<1x128xi32>
    %c0_4 = arith.constant 0 : index
    %c0_5 = arith.constant 0 : index
    %5 = vector.load %arg2[%c0_4, %c0_5] : memref<1x128xi32, #tpu.memory_space<vmem>>, vector<1x128xi32>
    %6 = tpu.iota {dimensions = array<i32: 0>} : vector<16x128xi32>
    %7 = vector.broadcast %4 : vector<1x128xi32> to vector<16x128xi32>
    %8 = arith.cmpi eq, %7, %6 : vector<16x128xi32>
    %9 = arith.extui %8 : vector<16x128xi1> to vector<16x128xi32>
    %10 = arith.sitofp %9 : vector<16x128xi32> to vector<16x128xf32>
    %11 = vector.broadcast %5 : vector<1x128xi32> to vector<16x128xi32>
    %12 = arith.cmpi eq, %11, %6 : vector<16x128xi32>
    %13 = arith.extui %12 : vector<16x128xi1> to vector<16x128xi32>
    %14 = arith.sitofp %13 : vector<16x128xi32> to vector<16x128xf32>
    %c0_6 = arith.constant 0 : index
    %c0_7 = arith.constant 0 : index
    %15 = vector.load %arg5[%c0_6, %c0_7] : memref<16x16xf32, #tpu.memory_space<vmem>>, vector<16x16xf32>
    %cst = arith.constant dense<0.000000e+00> : vector<16x128xf32>
    %16 = tpu.matmul %15, %10, %cst {dimension_numbers = #tpu.dot_dimension_numbers<[1], [0], [0], [1], [0, 0, 1, 1], [], []>} : vector<16x16xf32>, vector<16x128xf32>, vector<16x128xf32> -> vector<16x128xf32>
    %17 = arith.mulf %16, %14 : vector<16x128xf32>
    %cst_8 = arith.constant dense<0.000000e+00> : vector<128xf32>
    %18 = vector.multi_reduction <add>, %17, %cst_8 [0] : vector<16x128xf32> to vector<128xf32>
    %19 = vector.shape_cast %18 : vector<128xf32> to vector<1x128xf32>
    %cst_9 = arith.constant 0.000000e+00 : f32
    %20 = vector.broadcast %cst_9 : f32 to vector<1x128xf32>
    %21 = arith.cmpf oge, %19, %20 : vector<1x128xf32>
    %cst_10 = arith.constant 2.000000e-01 : f32
    %22 = vector.broadcast %cst_10 : f32 to vector<1x128xf32>
    %23 = arith.mulf %22, %19 : vector<1x128xf32>
    %24 = arith.select %21, %19, %23 : vector<1x128xi1>, vector<1x128xf32>
    %25 = tpu.iota {dimensions = array<i32: 1>} : vector<1x128xi32>
    %c128_i32 = arith.constant 128 : i32
    %26 = arith.muli %arg0, %c128_i32 : i32
    %27 = vector.broadcast %26 : i32 to vector<1x128xi32>
    %28 = arith.addi %27, %25 : vector<1x128xi32>
    %c300_i32 = arith.constant 300 : i32
    %29 = vector.broadcast %c300_i32 : i32 to vector<1x128xi32>
    %30 = arith.cmpi slt, %28, %29 : vector<1x128xi32>
    %cst_11 = arith.constant -1.000000e+30 : f32
    %31 = vector.broadcast %cst_11 : f32 to vector<1x128xf32>
    %32 = arith.select %30, %24, %31 : vector<1x128xi1>, vector<1x128xf32>
    %c0_12 = arith.constant 0 : index
    %c0_13 = arith.constant 0 : index
    %33 = vector.load %arg7[%c0_12, %c0_13] : memref<1x1xf32, #tpu.memory_space<vmem>>, vector<1x1xf32>
    %cst_14 = arith.constant dense<0xFF800000> : vector<1xf32>
    %34 = vector.multi_reduction <maximumf>, %32, %cst_14 [1] : vector<1x128xf32> to vector<1xf32>
    %35 = vector.shape_cast %34 : vector<1xf32> to vector<1x1xf32>
    %36 = arith.maximumf %33, %35 : vector<1x1xf32>
    %37 = arith.subf %33, %36 : vector<1x1xf32>
    %38 = math.exp %37 : vector<1x1xf32>
    %39 = vector.broadcast %36 : vector<1x1xf32> to vector<1x128xf32>
    %40 = arith.subf %32, %39 : vector<1x128xf32>
    %41 = math.exp %40 : vector<1x128xf32>
    %c0_15 = arith.constant 0 : index
    %c0_16 = arith.constant 0 : index
    %42 = vector.load %arg8[%c0_15, %c0_16] : memref<1x1xf32, #tpu.memory_space<vmem>>, vector<1x1xf32>
    %43 = arith.mulf %42, %38 : vector<1x1xf32>
    %cst_17 = arith.constant dense<0.000000e+00> : vector<1xf32>
    %44 = vector.multi_reduction <add>, %41, %cst_17 [1] : vector<1x128xf32> to vector<1xf32>
    %45 = vector.shape_cast %44 : vector<1xf32> to vector<1x1xf32>
    %46 = arith.addf %43, %45 : vector<1x1xf32>
    %c0_18 = arith.constant 0 : index
    %c0_19 = arith.constant 0 : index
    %47 = vector.load %arg8[%c0_18, %c0_19] : memref<1x1xf32, #tpu.memory_space<vmem>>, vector<1x1xf32>
    tpu.vector_store %arg8[%c0_18, %c0_19], %46 {strides = array<i32>} : memref<1x1xf32, #tpu.memory_space<vmem>>, vector<1x1xf32>,
    %c0_20 = arith.constant 0 : index
    %c0_21 = arith.constant 0 : index
    %48 = vector.load %arg7[%c0_20, %c0_21] : memref<1x1xf32, #tpu.memory_space<vmem>>, vector<1x1xf32>
    tpu.vector_store %arg7[%c0_20, %c0_21], %36 {strides = array<i32>} : memref<1x1xf32, #tpu.memory_space<vmem>>, vector<1x1xf32>,
    %49 = vector.broadcast %41 : vector<1x128xf32> to vector<16x128xf32>
    %50 = arith.mulf %14, %49 : vector<16x128xf32>
    %cst_22 = arith.constant dense<0.000000e+00> : vector<16x16xf32>
    %51 = tpu.matmul %10, %50, %cst_22 {dimension_numbers = #tpu.dot_dimension_numbers<[1], [1], [0], [0], [0, 0, 1, 0], [], []>} : vector<16x128xf32>, vector<16x128xf32>, vector<16x16xf32> -> vector<16x16xf32>
    %c0_23 = arith.constant 0 : index
    %c0_24 = arith.constant 0 : index
    %52 = vector.load %arg6[%c0_23, %c0_24] : memref<16x16xf32, #tpu.memory_space<vmem>>, vector<16x16xf32>
    %53 = vector.broadcast %38 : vector<1x1xf32> to vector<16x16xf32>
    %54 = arith.mulf %52, %53 : vector<16x16xf32>
    %55 = arith.addf %54, %51 : vector<16x16xf32>
    %c0_25 = arith.constant 0 : index
    %c0_26 = arith.constant 0 : index
    %56 = vector.load %arg6[%c0_25, %c0_26] : memref<16x16xf32, #tpu.memory_space<vmem>>, vector<16x16xf32>
    tpu.vector_store %arg6[%c0_25, %c0_26], %55 {strides = array<i32>} : memref<16x16xf32, #tpu.memory_space<vmem>>, vector<16x16xf32>,
    %c2_i32 = arith.constant 2 : i32
    %57 = arith.cmpi eq, %arg0, %c2_i32 : i32
    %58 = arith.extui %57 : i1 to i32
    %c0_i32_27 = arith.constant 0 : i32
    %59 = arith.cmpi ne, %58, %c0_i32_27 : i32
    scf.if %59 {
      %c0_28 = arith.constant 0 : index
      %c0_29 = arith.constant 0 : index
      %60 = vector.load %arg8[%c0_28, %c0_29] : memref<1x1xf32, #tpu.memory_space<vmem>>, vector<1x1xf32>
      %61 = tpu.reciprocal %60 : vector<1x1xf32> -> vector<1x1xf32>
      %c0_30 = arith.constant 0 : index
      %c0_31 = arith.constant 0 : index
      %62 = vector.load %arg6[%c0_30, %c0_31] : memref<16x16xf32, #tpu.memory_space<vmem>>, vector<16x16xf32>
      %cst_32 = arith.constant dense<0.000000e+00> : vector<16x32xf32>
      %63 = tpu.matmul %62, %0, %cst_32 {dimension_numbers = #tpu.dot_dimension_numbers<[1], [0], [0], [1], [0, 0, 1, 1], [], []>} : vector<16x16xf32>, vector<16x32xf32>, vector<16x32xf32> -> vector<16x32xf32>
      %64 = vector.broadcast %61 : vector<1x1xf32> to vector<16x32xf32>
      %65 = arith.mulf %63, %64 : vector<16x32xf32>
      %66 = arith.addf %65, %0 : vector<16x32xf32>
      %c0_33 = arith.constant 0 : index
      %c0_34 = arith.constant 0 : index
      %67 = vector.load %arg4[%c0_33, %c0_34] : memref<16x32xf32, #tpu.memory_space<vmem>>, vector<16x32xf32>
      tpu.vector_store %arg4[%c0_33, %c0_34], %66 {strides = array<i32>} : memref<16x32xf32, #tpu.memory_space<vmem>>, vector<16x32xf32>,
    } else {
    }
    return
  }
  func.func @transform_0(%arg0: i32) -> (i32, i32) {
    %c0_i32 = arith.constant 0 : i32
    %c0_i32_0 = arith.constant 0 : i32
    return %c0_i32, %arg0 : i32, i32
  }
  func.func @transform_1(%arg0: i32) -> (i32, i32) {
    %c0_i32 = arith.constant 0 : i32
    %c0_i32_0 = arith.constant 0 : i32
    return %c0_i32, %arg0 : i32, i32
  }
  func.func @transform_2(%arg0: i32) -> (i32, i32) {
    %c0_i32 = arith.constant 0 : i32
    %c0_i32_0 = arith.constant 0 : i32
    %c0_i32_1 = arith.constant 0 : i32
    return %c0_i32, %c0_i32_0 : i32, i32
  }
  func.func @transform_3(%arg0: i32) -> (i32, i32) {
    %c0_i32 = arith.constant 0 : i32
    %c0_i32_0 = arith.constant 0 : i32
    %c0_i32_1 = arith.constant 0 : i32
    return %c0_i32, %c0_i32_0 : i32, i32
  }
}

</mosaic_0001>

<bundles_post_ra>
// kernel: tpu_custom_call.1
= control target key start
LH: loop header
LB: loop body
LE: loop exit
PB: predicated region body
PF: predicated region fallthrough
CT: control target
= control target key end

     0   :  { %8 = vsyncpa [#allocation7], 0  ;;  %s1274_s0 = inlined_call_operand.hbm [shape: s32[1,384], index: 0, kind: input, shape index: {}]   ;;  %s1275_s1 = inlined_call_operand.vmem [shape: s32[1,384], index: 1, kind: input, shape index: {}]   ;;  %s1276_s2 = inlined_call_operand.hbm [shape: f32[16,32], index: 2, kind: input, shape index: {}]   ;;  %s1277_s3 = inlined_call_operand.hbm [shape: f32[16,32], index: 3, kind: output, shape index: {}]  }
   0x1   :  { %10 = vsyncpa [#allocation7 + $0x1], 0 }
   0x2   :  { %11 = vsyncpa [#allocation10], 0 }
   0x3   :  { %12 = vsyncpa [#allocation8], 0  ;;  %s1058_s12 = smov 0   ;;  %s1060_s13 = smov 0  }
   0x4   :  { %s1062_s14 = smov 0   ;;  %s1064_s15 = smov 0  }
   0x5 LB: > { %s1077_s16 = sadd.s32 4294967295, %s1022_s15   ;;  %p38_p0 = scmp.ne.s32.totalorder %s1014_s13, %s1010_s12  ;;  %s1022_s15 = sphi %s1064_s15, %s1293_s15   ;;  %s1018_s14 = sphi %s1062_s14, %s1292_s14   ;;  %s1014_s13 = sphi %s1060_s13, %s1291_s13   ;;  %s1010_s12 = sphi %s1058_s12, %s1290_s12  }
   0x6   : > { %p1278_p1 = scmp.eq.s32.totalorder %s1077_s16, 0  ;;  %p726_p2 = scmp.ge.s32.totalorder %s1022_s15, 1 }
   0x7   : > { %p117_p3 = scmp.lt.s32.totalorder %s1022_s15, 4  ;;  %s1024_s19 = smov [#allocation9]  }
   0x8   : > { %p1086_p5 = por %p1278_p1, %p38_p0  ;;  %s129_s20 = sshll.u32 %s1024_s19, 4  ;;  %s130_s20 = int_to_ptr.vmem [resolvable:$true] %s129_s20 }
   0x9   : > { %p1090_p6 = pnand %p726_p2, %p117_p3  ;;  %s1103_s22 = sadd.s32 1, %s1022_s15  }
   0xa   : > { %s1281_s17 = scalar_select %p1086_p5, 1, 0 }
   0xb   : > { %s1282_s18 = scalar_select %p1090_p6, 1, 0 }
   0xc   : > { %p829_p7 = pneg %p1090_p6  ;;  %s25_s23 = sadd.s32 1, %s1018_s14 }
   0xd   : > { %s22_s24 = ssub.s32 %s1022_s15, %s1103_s22  ;;  %s896_s27 = scalar_lea.hbm %s1276_s2, 256 }
   0xe   : > { %p1098_p8 = pnand %p829_p7, %p1278_p1  ;;  %p897_p9 = scmp.ne.s32.totalorder %s1276_s2, %s896_s27 }
   0xf   : > { %p903_p13 = scmp.lt.u32.totalorder %s896_s27, %s1276_s2 }
  0x10   : > { %p898_p10 = pneg %p1098_p8 }
  0x12   : > { %p899_p11 = pnand %p898_p10, %p897_p9 }
  0x14   : > { %p900_p12 = pneg %p899_p11 }
  0x16   : > { %p905_p0 = pnand %p903_p13, %p900_p12 }
  0x18   : > { %908 = shalt.err (!%p905_p0)
}
  0x19   : > { %s909_s5 = scalar_lea.vmem %s130_s20, 256  ;;  %p917_p4 = scmp.lt.s32.totalorder %s130_s20, %s130_s20 }
  0x1a   : > { %p910_p2 = scmp.ne.s32.totalorder %s130_s20, %s909_s5  ;;  %p918_p1 = scmp.lt.s32.totalorder %s909_s5, %s909_s5 }
  0x1c   : > { %p912_p3 = pnand %p910_p2, %p898_p10  ;;  %p919_p5 = por %p918_p1, %p917_p4 }
  0x1e   : > { %p913_p7 = pneg %p912_p3 }
  0x20   : > { %p920_p6 = pnand %p919_p5, %p913_p7 }
  0x22   : > { %923 = shalt.err (!%p920_p6)
}
  0x23   : > { %s1025_s6 = smov 128   ;;  %s1026_s7 = smov 8  }
  0x24   : > { %832 = dma.hbm_to_vmem [thread:$0]  (!%p1098_p8), %s1276_s2, 256, %s130_s20, [#allocation10], %s1025_s6, %s1025_s6, %s1026_s7  }
  0x25   : > { %p23_p9 = scmp.eq.s32.totalorder %s22_s24, 0  ;;  %p32_p10 = scmp.ne.s32.totalorder %s1018_s14, %s1014_s13 }
  0x26   : > { %p33_p1 = scmp.eq.s32.totalorder %s1022_s15, 0  ;;  %p838_p4 = scmp.lt.s32.totalorder %s1022_s15, 3 }
  0x27   : > { %s1129_s10 = scalar_select %p23_p9, %s1018_s14, %s25_s23  }
  0x28   : > { %p34_p5 = por %p33_p1, %p32_p10  ;;  %s143_s11 = sand.u32 1, %s1018_s14  }
  0x29   : > { %s729_s12 = sshll.u32 %s1022_s15, 4  ;;  %s146_s19 = scalar_lea.vmem [#allocation6], %s143_s11 }
  0x2a   : > { %s153_s25 = sshll.u32 %s146_s19, 4  ;;  %s1136_s28 = scalar_lea.hbm %s1274_s0, %s729_s12  ;;  %s1138_s25 = int_to_ptr.vmem [resolvable:$true] %s153_s25 }
  0x2b   : > { %p1140_p6 = pnand %p838_p4, %p34_p5  ;;  %s144_s15 = scalar_lea.sflag [#allocation7], %s143_s11 }
  0x2c   : > { %s924_s21 = scalar_lea.hbm %s1136_s28, 16  ;;  %s929_s29 = scalar_lea.hbm %s1274_s0, 48 }
  0x2d   : > { %p925_p8 = scmp.ne.s32.totalorder %s1136_s28, %s924_s21  ;;  %p926_p11 = pneg %p1140_p6 }
  0x2e   : > { %p930_p0 = scmp.lt.u32.totalorder %s1136_s28, %s1274_s0  ;;  %p931_p2 = scmp.lt.u32.totalorder %s929_s29, %s924_s21 }
  0x2f   : > { %p927_p12 = pnand %p926_p11, %p925_p8  ;;  %p933_p7 = scmp.lt.u32.totalorder %s924_s21, %s1136_s28 }
  0x30   : > { %p932_p3 = por %p931_p2, %p930_p0 }
  0x31   : > { %p928_p13 = pneg %p927_p12 }
  0x32   : > { %p934_p9 = por %p933_p7, %p932_p3 }
  0x34   : > { %p935_p10 = pnand %p934_p9, %p928_p13 }
  0x36   : > { %938 = shalt.err (!%p935_p10)
}
  0x37   : > { %s939_s5 = scalar_lea.vmem %s1138_s25, 16  ;;  %s1027_s6 = smov [#allocation6]  }
  0x38   : > { %p940_p1 = scmp.ne.s32.totalorder %s1138_s25, %s939_s5  ;;  %s944_s7 = sshll.u32 %s1027_s6, 4  ;;  %s945_s7 = int_to_ptr.vmem [resolvable:$false] %s944_s7 }
  0x39   : > { %s946_s8 = scalar_lea.vmem %s945_s7, 32  ;;  %p947_p8 = scmp.lt.s32.totalorder %s1138_s25, %s945_s7 }
  0x3a   : > { %p942_p4 = pnand %p940_p1, %p926_p11  ;;  %p948_p12 = scmp.lt.s32.totalorder %s946_s8, %s939_s5 }
  0x3c   : > { %p943_p5 = pneg %p942_p4  ;;  %p949_p0 = por %p948_p12, %p947_p8 }
  0x3e   : > { %p950_p2 = pnand %p949_p0, %p943_p5 }
  0x40   : > { %953 = shalt.err (!%p950_p2)
}
  0x41   : > { %836 = dma.hbm_to_vmem [thread:$0]  (!%p1140_p6), %s1136_s28, 16, %s1138_s25, %s144_s15  }
  0x42   : > { %p1285_p13 = scmp.ne.s32.totalorder %s1282_s18, 0 }
  0x43   : > { %s170_s9 = sand.u32 (!%p1285_p13), 1, %s1014_s13   ;;  %p1286_p11 = scmp.ne.s32.totalorder (!%p1285_p13), %s1281_s17, 0 }
  0x44   : > { %168 = sbr.rel (%p1285_p13) target bundleno = 1319 (0x527), region = 32  ;;  %s171_s11 = scalar_lea.sflag (!%p1285_p13), [#allocation7], %s170_s9 }
  0x45   : > { %s1172_s12 = scalar_lea.vmem (!%p1285_p13), [#allocation6], %s170_s9 }
  0x4b   : > { %997 = dma.done.wait (%p1286_p11), %s171_s11, 16  }
  0x4c   : > { %999 = vsyncadd (%p1286_p11), %s171_s11, 4294967280  ;;  %p1287_p3 = scmp.eq.s32.totalorder %s1077_s16, 0 }
  0x4e   : > { %1001 = dma.done.wait (%p1287_p3), [#allocation10], 256   ;;  %p1288_p7 = pmov %p1287_p3 }
  0x4f   : > { %p197_p6 = scmp.lt.s32.totalorder %s1077_s16, 2  ;;  %v1190_v0 = vld [vmem:[#allocation9] sm:$0xff]  ;;  %v1192_v1 = vld [vmem:[#allocation9 + $0x8] sm:$0xff]  ;;  %p1289_p9 = scmp.ne.s32.totalorder %s1077_s16, 0 }
  0x50   : > { %1003 = vsyncadd (%p1288_p7), [#allocation10], 4294967040  ;;  %vm206_vm0 = vcmask (!%p1289_p9), 261120   ;;  %v801_v2 = vpack.c.bf16 (!%p1289_p9), %v1192_v1, %v1190_v0  ;;  %vm288_vm2 = vcmask (!%p1289_p9), 130048   ;;  %vm293_vm3 = vcmask (!%p1289_p9), 0  }
  0x51   : > { %s1184_s18 = scalar_select %p197_p6, %s1077_s16, 2 }
  0x52   : > { %205 = sbr.rel (%p1289_p9) target bundleno = 305 (0x131), region = 44  ;;  %vm802_vm1 = vmpackc.low (!%p1289_p9), %vm206_vm0, %vm206_vm0  ;;  %777 = vmatprep.mubr.msk.f32.mxu0 (!%p1289_p9), %vm206_vm0, %v1190_v0  ;;  %v1028_v3 = vmov (!%p1289_p9), 0.0   ;;  %v1029_v4 = vmov (!%p1289_p9), -inf  }
  0x53   : > { %s199_s26 = scalar_lea.vmem %s1275_s1, %s1184_s18  ;;  %803 = vmatprep.subr.msk.bf16.mxu0 (!%p1289_p9), %vm802_vm1, %v801_v2  ;;  %291 = vst.msk [vmem:[#allocation3] sm:$0xff] (!%p1289_p9), %vm288_vm2, %v1028_v3  ;;  %292 = vst.msk [vmem:[#allocation3 + $0x8] sm:$0xff] (!%p1289_p9), %vm288_vm2, %v1028_v3 }
  0x54   : > { %806 = vmatpush3.bf16.xpose.msk.msra.mxu0 (!%p1289_p9), %vm802_vm1, %v801_v2  ;;  %294 = vst.msk [vmem:[#allocation4] sm:$0x1] (!%p1289_p9), %vm293_vm3, %v1029_v4  ;;  %295 = vst.msk [vmem:[#allocation5] sm:$0x1] (!%p1289_p9), %vm293_vm3, %v1028_v3 }
  0x5b   : > { %778 = vmatmul.mubr.msk.f32.vlgmr.msra.gmra.mrb[0].mxu0 %vm206_vm0, %v1192_v1 }
 0x12e   : > { %v779_v5 = vpop.f32.mrb[0].mxu0 }
 0x12f   : > { %290 = vst.msk [vmem:[#allocation2 + $0x8] sm:$0xff] %vm288_vm2, %v779_v5  ;;  %v279_v6 = vpop.f32.mrb[1].mxu0 }
 0x130   : > { %289 = vst.msk [vmem:[#allocation2] sm:$0xff] %vm288_vm2, %v279_v6 }
 0x131 PF: > { %v298_v7 = vlaneseq  ;;  %vm323_vm4 = vcmask 130048   ;;  %v1201_v9 = vld [vmem:[%s1172_s12] ss:$0 sm:$0xff]  ;;  %v1030_v12 = vmov 1.0|1.0   ;;  %v1031_v15 = vmov 0.0  }
 0x132   : > { %v740_v14 = vld [vmem:[%s199_s26] ss:$0 sm:$0xff]  ;;  %s747_s28 = sshll.u32 %s1077_s16, 7  ;;  %v1032_v35 = vmov 0   ;;  %vm448_vm12 = vcmask 0   ;;  %v1033_v40 = vmov 1.0  }
 0x133   : > { %v299_v10 = vshrl.u32 %v298_v7, 7  ;;  %v418_v26 = vand.u32 127, %v298_v7  ;;  %v420_v27 = vstv %s747_s28  ;;  %887 = vset.pattern.permute.xlu0 %v1032_v35  ;;  %888 = vset.pattern.permute.xlu1 %v1032_v35  ;;  %v424_v36 = vld [vmem:[#allocation4] sm:$0x1]  ;;  %v443_v53 = vld [vmem:[#allocation5] sm:$0x1] }
 0x134   : > { %v529_v57 = vld [vmem:[#allocation3 + $0x8] sm:$0xff]  ;;  %v528_v59 = vld [vmem:[#allocation3] sm:$0xff]  ;;  %p750_p10 = scmp.ne.s32.totalorder %s1077_s16, 2 }
 0x135   : > { %v1204_v11 = vadd.s32 8, %v299_v10  ;;  %vm305_vm5 = vcmp.eq.s32.totalorder %v1201_v9, %v299_v10  ;;  %vm315_vm9 = vcmp.eq.s32.totalorder %v740_v14, %v299_v10  ;;  %v421_v30 = vadd.s32 %v420_v27, %v418_v26 }
 0x136   : > { %v322_v13 = vld [vmem:[#allocation2 + $0x8] sm:$0xff]  ;;  %v741_v17 = vsel %vm315_vm9, 1.0, %v1031_v15  ;;  %791 = vmatprep.mubr.msk.f32.mxu1 %vm305_vm5, %v1033_v40  ;;  %v438_v41 = vsub.s32 0, %v299_v10  ;;  %v815_v4 = vpack.c.bf16 (!%p750_p10), %v1192_v1, %v1190_v0  ;;  %v1034_v7 = vmov (!%p750_p10), 0  }
 0x137   : > { %v321_v8 = vld [vmem:[#allocation2] sm:$0xff]  ;;  %vm306_vm6 = vcmp.eq.s32.totalorder %v1201_v9, %v1204_v11  ;;  %vm316_vm8 = vcmp.eq.s32.totalorder %v740_v14, %v1204_v11  ;;  %vm422_vm11 = vcmp.lt.s32.totalorder %v421_v30, 300  ;;  %vm647_vm13 = vcmask (!%p750_p10), 261120  }
 0x138   : > { %784 = vmatprep.mubr.msk.f32.mxu0 %vm323_vm4, %v321_v8  ;;  %vm807_vm7 = vmpackc.low %vm306_vm6, %vm305_vm5  ;;  %v742_v16 = vsel %vm316_vm8, 1.0, %v1031_v15 }
 0x139   : > { %808 = vmatprep.subr.msk.bf16.mxu0 %vm807_vm7, %v1030_v12 }
 0x13a   : > { %810 = vmatpush3.bf16.msk.msra.mxu0 %vm807_vm7, %v1030_v12 }
 0x13b   : > { %816 = vmatprep.subr.bf16.mxu0 (!%p750_p10), %v815_v4 }
 0x13d   : > { %785 = vmatmul.mubr.msk.f32.vlgmr.msra.gmra.mrb[0].mxu0 %vm323_vm4, %v322_v13 }
 0x13e   : > { %818 = vmatpush3.bf16.msra.mxu0 (!%p750_p10), %v815_v4 }
 0x210   : > { %v786_v18 = vpop.f32.mrb[0].mxu0 }
 0x211   : > { %v406_v19 = vmul.f32 %v786_v18, %v742_v16  ;;  %v396_v20 = vpop.f32.mrb[1].mxu0 }
 0x212   : > { %v405_v21 = vmul.f32 %v741_v17, %v396_v20 }
 0x214   : > { %v407_v22 = vadd.f32 %v406_v19, %v405_v21 }
 0x216   : > { %v408_v23 = vrot.slane %v407_v22, 4 }
 0x218   : > { %v409_v24 = vadd.f32 %v408_v23, %v407_v22 }
 0x21a   : > { %v410_v25 = vrot.slane %v409_v24, 2 }
 0x21c   : > { %v411_v28 = vadd.f32 %v410_v25, %v409_v24 }
 0x21e   : > { %v412_v29 = vrot.slane %v411_v28, 1 }
 0x220   : > { %v413_v31 = vadd.f32 %v412_v29, %v411_v28 }
 0x222   : > { %vm414_vm10 = vcmp.ge.f32.partialorder %v413_v31, 0.0  ;;  %v415_v32 = vmul.f32 0.2, %v413_v31 }
 0x224   : > { %v416_v33 = vsel %vm414_vm10, %v413_v31, %v415_v32 }
 0x225   : > { %v423_v34 = vsel %vm422_vm11, %v416_v33, -1e+30 }
 0x226   : > { %425 = vmax.xlane.f32.xlu0 %v423_v34 }
 0x2b3   : > { %v426_v37 = vpop.xlane.xlu0 %425 }
 0x2b4   : > { %v427_v38 = vmax.f32 %v424_v36, %v426_v37 }
 0x2b6   : > { %v428_v39 = vsub.f32 %v424_v36, %v427_v38  ;;  %450 = vst.msk [vmem:[#allocation4] sm:$0x1] %vm448_vm12, %v427_v38  ;;  %433 = vperm.xlu0 %887, %v427_v38  }
 0x2b8   : > { %v429_v46 = vmul.f32 1.442695, %v428_v39 }
 0x2ba   : > { %893 = vset.pattern.permute.xlu0 (!%p750_p10), %v1034_v7 }
 0x335   : > { %v434_v42 = vpop.permute.xlu0 %433 }
 0x336   : > { %v439_v43 = vrot.slane %v434_v42, %v438_v41 }
 0x338   : > { %v440_v44 = vsub.f32 %v423_v34, %v439_v43 }
 0x33a   : > { %v441_v45 = vmul.f32 1.442695, %v440_v44 }
 0x33c   : > { %889 = vpow2.f32 %v441_v45 }
 0x33d   : > { %891 = vpow2.f32 %v429_v46 }
 0x346   : > { %v890_v47 = vpop.eup %889 }
 0x347   : > { %445 = vadd.xlane.f32.xlu1 %v890_v47  ;;  %v451_v48 = vmul.f32 %v890_v47, %v741_v17  ;;  %v452_v49 = vmul.f32 %v890_v47, %v742_v16  ;;  %v892_v51 = vpop.eup %891 }
 0x348   : > { %v534_v52 = vrot.slane %v892_v51, %v438_v41  ;;  %v444_v54 = vmul.f32 %v892_v51, %v443_v53 }
 0x349   : > { %v811_v50 = vpack.c.bf16 %v452_v49, %v451_v48 }
 0x34b   : > { %812 = vmatprep.subr.bf16.mxu1 %v811_v50 }
 0x34c   : > { %814 = vmatpush3.bf16.xpose.msra.mxu1 %v811_v50 }
 0x353   : > { %792 = vmatmul.mubr.msk.f32.vlgmr.msra.gmra.mrb[0].mxu1 %vm306_vm6, %v1033_v40 }
 0x358   : > { %536 = vperm.xlu1 %888, %v534_v52  }
 0x3d4   : > { %v446_v55 = vpop.xlane.xlu1 %445 }
 0x3d5   : > { %v447_v56 = vadd.f32 %v446_v55, %v444_v54 }
 0x3d7   : > { %449 = vst.msk [vmem:[#allocation5] sm:$0x1] %vm448_vm12, %v447_v56 }
 0x3d8   : > { %v537_v58 = vpop.permute.xlu1 %536 }
 0x3d9   : > { %v540_v60 = vmul.f32 %v537_v58, %v529_v57  ;;  %v539_v61 = vmul.f32 %v537_v58, %v528_v59 }
 0x3de   : > { %v549_v6 = vld [vmem:[#allocation5] sm:$0x1] (!%p750_p10) }
 0x3df   : > { %894 = vrcp.f32 (!%p750_p10), %v549_v6 }
 0x3e9   : > { %v895_v9 = vpop.eup (!%p750_p10), %894 }
 0x3ea   : > { %v638_v10 = vrot.slane (!%p750_p10), %v895_v9, %v438_v41 }
 0x3ec   : > { %640 = vperm.xlu0 (!%p750_p10), %893, %v638_v10  }
 0x424   : > { %548 = sbr.rel (%p750_p10) target bundleno = 1293 (0x50d), region = 48 }
 0x426   : > { %v793_v62 = vpop.f32.mrb[0].mxu1 }
 0x427   : > { %v542_v63 = vadd.f32 %v793_v62, %v540_v60  ;;  %v519_v2 = vpop.f32.mrb[1].mxu1 }
 0x428   : > { %v541_v3 = vadd.f32 %v539_v61, %v519_v2 }
 0x429   : > { %544 = vst.msk [vmem:[#allocation3 + $0x8] sm:$0xff] %vm323_vm4, %v542_v63 }
 0x42a   : > { %543 = vst.msk [vmem:[#allocation3] sm:$0xff] %vm323_vm4, %v541_v3 }
 0x430   : > { %v552_v8 = vld [vmem:[#allocation3 + $0x8] sm:$0xff] }
 0x431   : > { %v551_v5 = vld [vmem:[#allocation3] sm:$0xff] }
 0x432   : > { %798 = vmatprep.mubr.msk.f32.mxu0 %vm323_vm4, %v551_v5 }
 0x433   : > { %799 = vmatmul.mubr.msk.f32.vlgmr.msra.gmra.mrb[0].mxu0 %vm323_vm4, %v552_v8 }
 0x46b   : > { %v641_v11 = vpop.permute.xlu0 %640 }
 0x506   : > { %v800_v12 = vpop.f32.mrb[0].mxu0 }
 0x507   : > { %v644_v13 = vmul.f32 %v800_v12, %v641_v11  ;;  %v625_v14 = vpop.f32.mrb[1].mxu0 }
 0x508   : > { %v643_v15 = vmul.f32 %v641_v11, %v625_v14 }
 0x509   : > { %v646_v16 = vadd.f32 %v644_v13, %v1192_v1 }
 0x50a   : > { %v645_v17 = vadd.f32 %v643_v15, %v1190_v0 }
 0x50b   : > { %649 = vst.msk [vmem:[#allocation11 + $0x8] sm:$0xff] %vm647_vm13, %v646_v16 }
 0x50c   : > { %648 = vst.msk [vmem:[#allocation11] sm:$0xff] %vm647_vm13, %v645_v17 }
 0x50d PF: > { %p840_p1 = scmp.eq.s32.totalorder %s1077_s16, 2  ;;  %s1035_s20 = smov [#allocation11]  }
 0x50e   : > { %s656_s15 = sshll.u32 %s1035_s20, 4  ;;  %s657_s15 = int_to_ptr.vmem [resolvable:$true] %s656_s15 }
 0x50f   : > { %s954_s21 = scalar_lea.vmem %s657_s15, 256  ;;  %p961_p12 = scmp.lt.s32.totalorder %s657_s15, %s657_s15 }
 0x510   : > { %p955_p4 = scmp.ne.s32.totalorder %s657_s15, %s954_s21  ;;  %p962_p0 = scmp.lt.s32.totalorder %s954_s21, %s954_s21 }
 0x512   : > { %p956_p5 = pnand %p955_p4, %p840_p1  ;;  %p963_p2 = por %p962_p0, %p961_p12 }
 0x514   : > { %p957_p8 = pneg %p956_p5 }
 0x516   : > { %p964_p13 = pnand %p963_p2, %p957_p8 }
 0x518   : > { %967 = shalt.err (!%p964_p13)
}
 0x519   : > { %s968_s29 = scalar_lea.hbm %s1277_s3, 256 }
 0x51a   : > { %p969_p11 = scmp.ne.s32.totalorder %s1277_s3, %s968_s29  ;;  %p974_p6 = scmp.lt.u32.totalorder %s968_s29, %s1277_s3 }
 0x51c   : > { %p970_p3 = pnand %p969_p11, %p840_p1 }
 0x51e   : > { %p971_p7 = pneg %p970_p3 }
 0x520   : > { %p976_p9 = pnand %p974_p6, %p971_p7 }
 0x522   : > { %979 = shalt.err (!%p976_p9)
}
 0x523   : > { %s1036_s7 = smov 128   ;;  %s1037_s8 = smov 8  }
 0x524   : > { %826 = dma.vmem_to_hbm [thread:$0]  (%p840_p1), %s657_s15, 256, %s1277_s3, [#allocation8], %s1036_s7, %s1036_s7, %s1037_s8  }
 0x525   : > { %1005 = dma.done.wait (%p840_p1), [#allocation8], 256  }
 0x526   : > { %1007 = vsyncadd (%p840_p1), [#allocation8], 4294967040 }
 0x527 PF: > { %p15_p10 = scmp.ge.s32.totalorder %s1103_s22, 5   ;;  %s1290_s12 = smov %s1014_s13 }
 0x528   : > { %s1291_s13 = smov %s1018_s14  ;;  %s1292_s14 = smov %s1129_s10 }
 0x529   : > { %s1293_s15 = smov %s1103_s22  ;;  %17 = sbr.rel (!%p15_p10) target bundleno = 5 (0x5), region = 84 }
 0x530   :  { %672 = vsyncpa [#allocation7], 1 }
 0x531   :  { %674 = vsyncpa [#allocation7 + $0x1], 1 }
 0x532   :  { %675 = vsyncpa [#allocation10], 1 }
 0x533   :  { %676 = vsyncpa [#allocation8], 1 }
 0x534   :  { %678 = vsyncpa [#allocation8 + $0x1], 1 }

</bundles_post_ra>
